<compile_context>
chip_gen: v7x
topology: tpu7x:2x2x1
jax: 0.10.0
libtpu: 0.0.40
codegen_flags: <defaults>
</compile_context>

<pallas_src>
import functools

import jax
import jax.numpy as jnp
from jax.experimental import pallas as pl
from jax.experimental.pallas import tpu as pltpu


def _adaptive_concat_pool_kernel(x_ref, o_ref, *, inv_hw):
    # x_ref: (Nb, C, HW)   o_ref: (Nb, 2, C)
    x = x_ref[...].astype(jnp.float32)                    # f32 accumulation
    s = jnp.sum(x, axis=-1)                               # (Nb, C) spatial sum
    mean = s * jnp.float32(inv_hw)                        # scale by 1/(H*W)
    # pool_one and pool_two are both AdaptiveAvgPool2d((1,1)) => identical
    # results; write the mean into both rows with one unmasked full-block store.
    o_ref[...] = jnp.broadcast_to(mean[:, None, :], o_ref.shape).astype(o_ref.dtype)


def _round_up(a, b):
    return (a + b - 1) // b * b


def adaptive_concat_pool2d(x):
    """x: (N, C, H, W) -> (N, 2C, 1, 1), same semantics as the PyTorch module."""
    N, C, H, W = x.shape
    HW = H * W
    x_flat = x.reshape(N, C, HW)                          # free row-major reshape

    # --- pick Nb so one input tile is ~4 MiB (padded to TPU tiling), capped so
    # the parallel grid has at least 2 steps when N > 1 (megacore balance).
    itemsize = jnp.dtype(x.dtype).itemsize
    per_sample_bytes = _round_up(C, 32) * _round_up(HW, 128) * itemsize
    target_bytes = 4 * 1024 * 1024
    nb = max(1, min(N, target_bytes // max(per_sample_bytes, 1)))
    if N > 1:
        nb = max(1, min(nb, pl.cdiv(N, 2)))
    grid = (pl.cdiv(N, nb),)

    cost = pl.CostEstimate(
        flops=N * C * HW,                                  # reduction adds
        transcendentals=0,
        bytes_accessed=N * C * HW * itemsize + N * 2 * C * itemsize,
    )

    out = pl.pallas_call(
        functools.partial(_adaptive_concat_pool_kernel, inv_hw=1.0 / float(HW)),
        out_shape=jax.ShapeDtypeStruct((N, 2, C), x.dtype),
        grid_spec=pltpu.PrefetchScalarGridSpec(
            num_scalar_prefetch=0,
            grid=grid,
            in_specs=[pl.BlockSpec((nb, C, HW), lambda n: (n, 0, 0))],
            out_specs=pl.BlockSpec((nb, 2, C), lambda n: (n, 0, 0)),
        ),
        compiler_params=pltpu.CompilerParams(
            dimension_semantics=("parallel",)),
        cost_estimate=cost,
    )(x_flat)

    # (N, 2, C) row-major -> (N, 2C): first C = pool_one, next C = pool_two.
    return out.reshape(N, 2 * C, 1, 1)


if __name__ == "__main__":
    key = jax.random.PRNGKey(0)
    N, C, H, W = 2, 4, 16, 16
    x = jax.random.normal(key, (N, C, H, W), dtype=jnp.float32)

    y = adaptive_concat_pool2d(x)
    jax.block_until_ready(y)

    # sanity check against pure-JAX reference
    ref_mean = jnp.mean(x.astype(jnp.float32), axis=(2, 3), keepdims=True)   # (N, C, 1, 1)
    ref = jnp.concatenate([ref_mean, ref_mean], axis=1).astype(x.dtype)      # (N, 2C, 1, 1)
    assert y.shape == (N, 2 * C, 1, 1), y.shape
    assert jnp.allclose(y, ref, atol=1e-5, rtol=1e-5), "mismatch vs reference"

    print("KERNEL_OK")
</pallas_src>

<mosaic_0001>
module attributes {stable_mosaic.version = 11 : i64} {
  func.func @_adaptive_concat_pool_kernel(%arg0: i32, %arg1: memref<1x4x256xf32, #tpu.memory_space<vmem>>, %arg2: memref<1x2x4xf32, #tpu.memory_space<vmem>>) attributes {dimension_semantics = [#tpu.dimension_semantics<parallel>], iteration_bounds = array<i64: 2>, scalar_prefetch = 0 : i64, scratch_operands = 0 : i64, tpu.core_type = #tpu.core_type<tc>, window_params = [{transform_indices = @transform_0, window_bounds = array<i64: 1, 4, 256>}, {transform_indices = @transform_1, window_bounds = array<i64: 1, 2, 4>}]} {
    %c0 = arith.constant 0 : index
    %c0_0 = arith.constant 0 : index
    %c0_1 = arith.constant 0 : index
    %0 = vector.load %arg1[%c0, %c0_0, %c0_1] : memref<1x4x256xf32, #tpu.memory_space<vmem>>, vector<1x4x256xf32>
    %cst = arith.constant dense<0.000000e+00> : vector<1x4xf32>
    %1 = vector.multi_reduction <add>, %0, %cst [2] : vector<1x4x256xf32> to vector<1x4xf32>
    %cst_2 = arith.constant 3.906250e-03 : f32
    %2 = vector.broadcast %cst_2 : f32 to vector<1x4xf32>
    %3 = arith.mulf %1, %2 : vector<1x4xf32>
    %4 = vector.shape_cast %3 : vector<1x4xf32> to vector<1x1x4xf32>
    %5 = vector.shape_cast %4 : vector<1x1x4xf32> to vector<1x1x4xf32>
    %6 = vector.broadcast %5 : vector<1x1x4xf32> to vector<1x2x4xf32>
    %c0_3 = arith.constant 0 : index
    %c0_4 = arith.constant 0 : index
    %c0_5 = arith.constant 0 : index
    %7 = vector.load %arg2[%c0_3, %c0_4, %c0_5] : memref<1x2x4xf32, #tpu.memory_space<vmem>>, vector<1x2x4xf32>
    tpu.vector_store %arg2[%c0_3, %c0_4, %c0_5], %6 {strides = array<i32>} : memref<1x2x4xf32, #tpu.memory_space<vmem>>, vector<1x2x4xf32>,
    return
  }
  func.func @transform_0(%arg0: i32) -> (i32, i32, i32) {
    %c0_i32 = arith.constant 0 : i32
    %c0_i32_0 = arith.constant 0 : i32
    %c0_i32_1 = arith.constant 0 : i32
    return %arg0, %c0_i32, %c0_i32_0 : i32, i32, i32
  }
  func.func @transform_1(%arg0: i32) -> (i32, i32, i32) {
    %c0_i32 = arith.constant 0 : i32
    %c0_i32_0 = arith.constant 0 : i32
    %c0_i32_1 = arith.constant 0 : i32
    return %arg0, %c0_i32, %c0_i32_0 : i32, i32, i32
  }
}

</mosaic_0001>

<bundles_post_ra>
// kernel: tpu_custom_call.1
= control target key start
LH: loop header
LB: loop body
LE: loop exit
PB: predicated region body
PF: predicated region fallthrough
CT: control target
= control target key end

     0   :  { %6 = vsyncpa [#allocation3], 0  ;;  %s571_s0 = inlined_call_operand.hbm [shape: f32[2,4,256], index: 0, kind: input, shape index: {}]   ;;  %s572_s1 = inlined_call_operand.hbm [shape: f32[2,2,4], index: 1, kind: output, shape index: {}]  }
   0x1   :  { %8 = vsyncpa [#allocation3 + $0x1], 0 }
   0x2   :  { %9 = vsyncpa [#allocation4], 0 }
   0x3   :  { %11 = vsyncpa [#allocation4 + $0x1], 0  ;;  %s409_s6 = smov 0   ;;  %s411_s7 = smov 0  }
   0x4   :  { %s413_s8 = smov 0   ;;  %s415_s9 = smov 0  }
   0x5 LB: > { %s430_s10 = sadd.s32 4294967295, %s395_s9   ;;  %s238_s11 = sadd.s32 4294967294, %s395_s9   ;;  %s395_s9 = sphi %s415_s9, %s587_s9   ;;  %s391_s8 = sphi %s413_s8, %s586_s8   ;;  %s387_s7 = sphi %s411_s7, %s585_s7   ;;  %s383_s6 = sphi %s409_s6, %s584_s6  }
   0x6   : > { %s434_s12 = sadd.s32 1, %s395_s9   ;;  %s24_s13 = sadd.s32 1, %s391_s8 }
   0x7   : > { %s21_s14 = ssub.s32 %s395_s9, %s434_s12  ;;  %p31_p0 = scmp.ne.s32.totalorder %s391_s8, %s387_s7 }
   0x8   : > { %p22_p1 = scmp.eq.s32.totalorder %s21_s14, 0  ;;  %p32_p2 = scmp.eq.s32.totalorder %s395_s9, 0 }
   0x9   : > { %p37_p3 = scmp.ne.s32.totalorder %s387_s7, %s383_s6  ;;  %p38_p4 = scmp.eq.s32.totalorder %s430_s10, 0 }
   0xa   : > { %s446_s15 = scalar_select %p22_p1, %s391_s8, %s24_s13  }
   0xb   : > { %p448_p5 = por %p32_p2, %p31_p0  ;;  %p452_p6 = por %p38_p4, %p37_p3 }
   0xc   : > { %p61_p7 = scmp.eq.s32.totalorder %s430_s10, 1  ;;  %p67_p8 = scmp.eq.s32.totalorder %s238_s11, 1 }
   0xd   : > { %p264_p10 = scmp.lt.s32.totalorder %s395_s9, 2  ;;  %s87_s20 = sand.u32 1, %s391_s8  }
   0xe   : > { %p459_p11 = por %p61_p7, %p31_p0  ;;  %p463_p12 = por %p67_p8, %p37_p3 }
   0xf   : > { %s251_s21 = sshll.u32 %s395_s9, 7  ;;  %s241_s22 = sshll.u32 %s87_s20, 3 }
  0x10   : > { %s576_s18 = scalar_select %p459_p11, 1, 0 }
  0x11   : > { %s577_s19 = scalar_select %p463_p12, 1, 0 }
  0x12   : > { %s472_s25 = scalar_lea.hbm %s571_s0, %s251_s21  ;;  %s91_s26 = scalar_lea.vmem [#allocation2], %s241_s22 }
  0x13   : > { %s99_s27 = sshll.u32 %s91_s26, 4  ;;  %p476_p13 = pnand %p264_p10, %p448_p5  ;;  %s480_s27 = int_to_ptr.vmem [resolvable:$true] %s99_s27 }
  0x14   : > { %s88_s29 = scalar_lea.sflag [#allocation3], %s87_s20  ;;  %s299_s30 = scalar_lea.hbm %s472_s25, 128 }
  0x15   : > { %p300_p2 = scmp.ne.s32.totalorder %s472_s25, %s299_s30  ;;  %p301_p3 = pneg %p476_p13 }
  0x16   : > { %s304_s4 = scalar_lea.hbm %s571_s0, 256  ;;  %p305_p5 = scmp.lt.u32.totalorder %s472_s25, %s571_s0 }
  0x17   : > { %p302_p4 = pnand %p301_p3, %p300_p2  ;;  %p306_p8 = scmp.lt.u32.totalorder %s304_s4, %s299_s30 }
  0x18   : > { %p308_p9 = scmp.lt.u32.totalorder %s299_s30, %s472_s25 }
  0x19   : > { %p303_p7 = pneg %p302_p4  ;;  %p307_p10 = por %p306_p8, %p305_p5 }
  0x1b   : > { %p309_p0 = por %p308_p9, %p307_p10 }
  0x1d   : > { %p310_p1 = pnand %p309_p0, %p303_p7 }
  0x1f   : > { %313 = shalt.err (!%p310_p1)
}
  0x20   : > { %s314_s13 = scalar_lea.vmem %s480_s27, 128  ;;  %s397_s14 = smov [#allocation2]  }
  0x21   : > { %p315_p2 = scmp.ne.s32.totalorder %s480_s27, %s314_s13  ;;  %s319_s16 = sshll.u32 %s397_s14, 4  ;;  %s320_s16 = int_to_ptr.vmem [resolvable:$false] %s319_s16 }
  0x22   : > { %s321_s20 = scalar_lea.vmem %s320_s16, 256  ;;  %p322_p11 = scmp.lt.s32.totalorder %s480_s27, %s320_s16 }
  0x23   : > { %p317_p4 = pnand %p315_p2, %p301_p3  ;;  %p323_p5 = scmp.lt.s32.totalorder %s321_s20, %s314_s13 }
  0x25   : > { %p318_p12 = pneg %p317_p4  ;;  %p324_p8 = por %p323_p5, %p322_p11 }
  0x27   : > { %p325_p9 = pnand %p324_p8, %p318_p12 }
  0x29   : > { %328 = shalt.err (!%p325_p9)
}
  0x2a   : > { %259 = dma.hbm_to_vmem [thread:$0]  (!%p476_p13), %s472_s25, 128, %s480_s27, %s88_s29  }
  0x2b   : > { %p579_p0 = scmp.lt.s32.totalorder %s395_s9, 3  ;;  %p580_p1 = scmp.ge.s32.totalorder %s395_s9, 1 }
  0x2d   : > { %p105_p3 = pnand %p580_p1, %p579_p0 }
  0x2e   : > { %s514_s21 = sand.u32 (!%p105_p3), 1, %s387_s7  }
  0x2f   : > { %108 = sbr.rel (%p105_p3) target bundleno = 221 (0xdd), region = 24  ;;  %s245_s22 = sshll.u32 (!%p105_p3), %s514_s21, 3 }
  0x30   : > { %s111_s23 = scalar_lea.sflag (!%p105_p3), [#allocation3], %s514_s21  ;;  %s114_s24 = scalar_lea.vmem (!%p105_p3), [#allocation2], %s245_s22 }
  0x36   : > { %374 = dma.done.wait (%p452_p6), %s111_s23, 128  }
  0x37   : > { %376 = vsyncadd (%p452_p6), %s111_s23, 4294967168  ;;  %vm137_vm0 = vcmask 1043456   ;;  %v133_v0 = vld [vmem:[%s114_s24] sm:$0xff]  ;;  %v145_v5 = vlaneseq  ;;  %s246_s25 = sshll.u32 %s514_s21, 1  ;;  %s248_s26 = sshll.u32 %s430_s10, 5  ;;  %vm152_vm1 = vcmask 25600  }
  0x38   : > { %v135_v1 = vcombine.high %v133_v0, %v133_v0  ;;  %v138_v2 = vsel %vm137_vm0, %v133_v0, 0.0  ;;  %s132_s17 = scalar_lea.vmem [#allocation5], %s246_s25  ;;  %s527_s30 = scalar_lea.hbm %s572_s1, %s248_s26 }
  0x39   : > { %v146_v6 = vand.u32 127, %v145_v5  ;;  %v148_v7 = vshrl.u32 %v145_v5, 7  ;;  %s168_s27 = sshll.u32 %s132_s17, 4  ;;  %s155_s2 = scalar_lea.sflag [#allocation4], %s514_s21  ;;  %s529_s27 = int_to_ptr.vmem [resolvable:$true] %s168_s27 }
  0x3a   : > { %v139_v3 = vsel %vm137_vm0, %v135_v1, 0.0  ;;  %s329_s3 = scalar_lea.vmem %s529_s27, 32  ;;  %p581_p11 = scmp.ne.s32.totalorder %s576_s18, 0 }
  0x3b   : > { %v140_v4 = vadd.f32 %v139_v3, %v138_v2  ;;  %v149_v8 = vsub.s32 %v146_v6, %v148_v7  ;;  %p330_p6 = scmp.ne.s32.totalorder %s529_s27, %s329_s3  ;;  %s398_s10 = smov [#allocation5]  }
  0x3c   : > { %s333_s4 = sshll.u32 %s398_s10, 4  ;;  %s334_s4 = int_to_ptr.vmem [resolvable:$false] %s333_s4 }
  0x3d   : > { %141 = vadd.xlane.f32.xlu0 %v140_v4  ;;  %p331_p12 = pnand %p330_p6, %p581_p11  ;;  %s335_s5 = scalar_lea.vmem %s334_s4, 64 }
  0x3e   : > { %p336_p7 = scmp.lt.s32.totalorder %s529_s27, %s334_s4  ;;  %p337_p10 = scmp.lt.s32.totalorder %s335_s5, %s329_s3 }
  0x3f   : > { %p332_p13 = pneg %p331_p12 }
  0x40   : > { %p338_p2 = por %p337_p10, %p336_p7 }
  0x42   : > { %p339_p4 = pnand %p338_p2, %p332_p13 }
  0xca   : > { %v142_v9 = vpop.xlane.xlu0 %141 }
  0xcb   : > { %v143_v10 = vmul.f32 0.00390625, %v142_v9 }
  0xcd   : > { %v150_v11 = vrot.slane %v143_v10, %v149_v8 }
  0xcf   : > { %153 = vst.msk [vmem:[%s132_s17] sm:$0x3] %vm152_vm1, %v150_v11 }
  0xd0   : > { %342 = shalt.err (!%p339_p4)
}
  0xd1   : > { %s343_s11 = scalar_lea.hbm %s527_s30, 32  ;;  %s347_s16 = scalar_lea.hbm %s572_s1, 64 }
  0xd2   : > { %p344_p5 = scmp.ne.s32.totalorder %s527_s30, %s343_s11  ;;  %p348_p0 = scmp.lt.u32.totalorder %s527_s30, %s572_s1 }
  0xd3   : > { %p349_p1 = scmp.lt.u32.totalorder %s347_s16, %s343_s11  ;;  %p351_p6 = scmp.lt.u32.totalorder %s343_s11, %s527_s30 }
  0xd4   : > { %p345_p8 = pnand %p344_p5, %p581_p11 }
  0xd5   : > { %p350_p3 = por %p349_p1, %p348_p0 }
  0xd6   : > { %p346_p9 = pneg %p345_p8 }
  0xd7   : > { %p352_p12 = por %p351_p6, %p350_p3 }
  0xd9   : > { %p353_p13 = pnand %p352_p12, %p346_p9 }
  0xdb   : > { %356 = shalt.err (!%p353_p13)
}
  0xdc   : > { %254 = dma.vmem_to_hbm [thread:$0]  (%p581_p11), %s529_s27, 32, %s527_s30, %s155_s2  }
  0xdd PF: > { %s180_s22 = sand.u32 1, %s383_s6   ;;  %p582_p7 = scmp.ne.s32.totalorder %s577_s19, 0 }
  0xde   : > { %p583_p10 = scmp.ge.s32.totalorder %s395_s9, 2  ;;  %s181_s23 = scalar_lea.sflag [#allocation4], %s180_s22 }
  0xe0   : > { %p261_p2 = pnand %p583_p10, %p582_p7 }
  0xe2   : > { %378 = dma.done.wait (!%p261_p2), %s181_s23, 32  }
  0xe3   : > { %380 = vsyncadd (!%p261_p2), %s181_s23, 4294967264  ;;  %p14_p4 = scmp.ge.s32.totalorder %s434_s12, 4   ;;  %s584_s6 = smov %s387_s7 }
  0xe4   : > { %s585_s7 = smov %s391_s8  ;;  %s586_s8 = smov %s446_s15 }
  0xe5   : > { %s587_s9 = smov %s434_s12  ;;  %16 = sbr.rel (!%p14_p4) target bundleno = 5 (0x5), region = 69 }
  0xec   :  { %186 = vsyncpa [#allocation3], 1 }
  0xed   :  { %188 = vsyncpa [#allocation3 + $0x1], 1 }
  0xee   :  { %189 = vsyncpa [#allocation4], 1 }
  0xef   :  { %191 = vsyncpa [#allocation4 + $0x1], 1 }

</bundles_post_ra>
